<compile_context>
chip_gen: v6e
topology: v6e:2x2x1
jax: 0.10.0
libtpu: 0.0.40
codegen_flags: <defaults>
</compile_context>

<pallas_src>
import jax
import jax.numpy as jnp
from jax.experimental import pallas as pl
from jax.experimental.pallas import tpu as pltpu


def _nll_sum_kernel(pred_ref, tgt_ref, out_ref):
    """Accumulate per-lane sums of pred[row, target[row]] for this partial."""
    i = pl.program_id(1)  # row-block index within the partial ("arbitrary")

    @pl.when(i == 0)
    def _init():
        out_ref[...] = jnp.zeros_like(out_ref)

    tile_r, lanes = pred_ref.shape
    k = tgt_ref.shape[1]  # rows folded into one lane row (1 if unfolded)

    # Targets already hold the flat lane index of the true class within the
    # folded row (or the -1 sentinel for padded / out-of-bounds rows).
    lane = jax.lax.broadcasted_iota(jnp.int32, (tile_r, lanes), 1)
    tgt = tgt_ref[...]
    mask = lane == tgt[:, 0:1]
    for j in range(1, k):  # static unroll, k <= 16
        mask = jnp.logical_or(mask, lane == tgt[:, j:j + 1])

    # Select in the native dtype (cheap on bf16-capable VPUs); upcast only the
    # selected values for the f32 accumulation.  `where` (a select, not a mul)
    # also guarantees -inf log-probs / OOB garbage never produce NaNs.
    sel = jnp.where(mask, pred_ref[...], 0).astype(jnp.float32)

    # Row (sublane-major) reduction into the resident (8, lanes) accumulator.
    # The reshape is tile-aligned (tile_r % 8 == 0), so it is layout-free.
    out_ref[...] += jnp.sum(sel.reshape(tile_r // 8, 8, lanes), axis=0)


def _round_up(x, m):
    return ((x + m - 1) // m) * m


def _vmem_capacity_bytes():
    try:
        return int(pltpu.get_tpu_info().vmem_capacity_bytes)
    except Exception:
        return 64 * 1024 * 1024  # conservative fallback (v7x per-TensorCore VMEM)


def _pick_tile_rows(lanes, itemsize, k, vmem_cap):
    """Row-block size from the *padded* VMEM footprint of both input streams."""
    pred_row = _round_up(lanes, 128) * itemsize       # (8,128)-padded pred row
    tgt_row = _round_up(k, 128) * 4                   # int32 targets pad to 128 lanes
    per_row = pred_row + tgt_row
    # Both inputs are double-buffered (x2); leave headroom for the resident
    # accumulator tile, semaphores and compiler scratch.
    budget = min(int(vmem_cap * 0.45), 48 * 1024 * 1024)
    tile_r = budget // (2 * per_row)
    return max(8, min((tile_r // 8) * 8, 1 << 16))


def nll_loss_pallas(pred, target, trans_feat=None, *, tile_rows=None):
    """Equivalent of get_loss.forward(pred, target, trans_feat)."""
    del trans_feat  # unused by the reference module
    n, c = pred.shape
    itemsize = jnp.dtype(pred.dtype).itemsize

    # ---- lane folding: view k consecutive rows as one lane-dense row --------
    k = 1
    if c < 128 and 128 % c == 0:
        kk = 128 // c
        if kk <= 16 and n % kk == 0:
            k = kk
    nf = n // k
    lanes = k * c

    pred_f = pred.reshape(nf, lanes)                  # same contiguous HBM bytes
    tgt = target.astype(jnp.int32).reshape(nf, k)
    tgt_flat = tgt + (jnp.arange(k, dtype=jnp.int32) * c)[None, :]

    # Tiny inputs only: pad pred rows to 8 so the block row count can be a
    # multiple of 8 without exceeding the array (negligible copy).
    nf_arr = nf
    if nf_arr < 8:
        pred_f = jnp.pad(pred_f, ((0, 8 - nf_arr), (0, 0)))
        nf_arr = 8

    # ---- tile sizing (padded-VMEM-aware, chip-aware) -------------------------
    vmem_cap = _vmem_capacity_bytes()
    if tile_rows is None:
        tile_r = _pick_tile_rows(lanes, itemsize, k, vmem_cap)
    else:
        tile_r = max(8, (int(tile_rows) // 8) * 8)    # keep (8,128) legality
    tile_r = min(tile_r, (nf_arr // 8) * 8)

    nblocks = -(-nf_arr // tile_r)
    # Optional 2-way split of the row blocks on a leading "parallel" axis.
    num_parts = 2 if (nblocks >= 2 and nblocks % 2 == 0) else 1
    bpp = nblocks // num_parts

    # Sentinel-pad targets to the full grid extent: padded / out-of-bounds rows
    # can never match a lane index, so no bounds mask is needed in the kernel.
    pad_rows = nblocks * tile_r - nf
    if pad_rows > 0:
        tgt_flat = jnp.pad(tgt_flat, ((0, pad_rows), (0, 0)), constant_values=-1)

    cost = pl.CostEstimate(
        flops=int((2 * k + 3) * nf_arr * lanes),
        transcendentals=0,
        bytes_accessed=int(n * c * itemsize + (nf + pad_rows) * k * 4
                           + num_parts * 8 * lanes * 4),
    )

    partials = pl.pallas_call(
        _nll_sum_kernel,
        out_shape=jax.ShapeDtypeStruct((num_parts * 8, lanes), jnp.float32),
        grid_spec=pltpu.PrefetchScalarGridSpec(
            num_scalar_prefetch=0,
            grid=(num_parts, bpp),
            in_specs=[
                pl.BlockSpec((tile_r, lanes), lambda p, i, b=bpp: (p * b + i, 0)),
                pl.BlockSpec((tile_r, k), lambda p, i, b=bpp: (p * b + i, 0)),
            ],
            out_specs=pl.BlockSpec((8, lanes), lambda p, i: (p, 0)),
        ),
        compiler_params=pltpu.CompilerParams(
            dimension_semantics=("parallel", "arbitrary"),
            vmem_limit_bytes=int(min(vmem_cap * 0.75, 100 * 1024 * 1024)),
        ),
        cost_estimate=cost,
    )(pred_f, tgt_flat)

    # Single cross-lane/sublane reduction in the epilogue; mean over true N.
    return -jnp.sum(partials) / jnp.float32(n)


if __name__ == "__main__":
    key = jax.random.PRNGKey(0)
    k1, k2 = jax.random.split(key)

    def ref_loss(pred, target):
        p = pred.astype(jnp.float32)
        return -jnp.mean(p[jnp.arange(p.shape[0]), target])

    # 1) Module's usage: small batch of class log-probabilities (folded path).
    N, C = 8, 32
    logits = jax.random.normal(k1, (N, C), dtype=jnp.float32)
    pred = jax.nn.log_softmax(logits, axis=-1)
    target = jax.random.randint(k2, (N,), 0, C, dtype=jnp.int32)
    loss = nll_loss_pallas(pred, target, trans_feat=None)
    jax.block_until_ready(loss)
    assert jnp.allclose(loss, ref_loss(pred, target), atol=1e-5, rtol=1e-5), (
        loss, ref_loss(pred, target))

    # 2) bf16 log-probs: bf16 through DMA + select, f32 accumulation.
    pred_bf = pred.astype(jnp.bfloat16)
    loss_bf = nll_loss_pallas(pred_bf, target, None)
    jax.block_until_ready(loss_bf)
    assert jnp.allclose(loss_bf, ref_loss(pred_bf, target), atol=1e-2, rtol=1e-2)

    # 3) Multi-block + 2-partial "parallel" split + folded lanes.
    N3, C3 = 64, 32
    logits3 = jax.random.normal(k2, (N3, C3), dtype=jnp.float32)
    pred3 = jax.nn.log_softmax(logits3, axis=-1)
    target3 = jax.random.randint(k1, (N3,), 0, C3, dtype=jnp.int32)
    loss3 = nll_loss_pallas(pred3, target3, None, tile_rows=8)
    jax.block_until_ready(loss3)
    assert jnp.allclose(loss3, ref_loss(pred3, target3), atol=1e-5, rtol=1e-5)

    # 4) C not dividing 128 (unfolded fallback) + ragged last block
    #    (exercises sentinel-target masking of out-of-bounds rows).
    N4, C4 = 20, 40
    logits4 = jax.random.normal(k1, (N4, C4), dtype=jnp.float32)
    pred4 = jax.nn.log_softmax(logits4, axis=-1)
    target4 = jax.random.randint(k2, (N4,), 0, C4, dtype=jnp.int32)
    loss4 = nll_loss_pallas(pred4, target4, None, tile_rows=8)
    jax.block_until_ready(loss4)
    assert jnp.allclose(loss4, ref_loss(pred4, target4), atol=1e-5, rtol=1e-5)

    # 5) Wide classes (C >= 128, already lane-dense).
    N5, C5 = 16, 256
    logits5 = jax.random.normal(k2, (N5, C5), dtype=jnp.float32)
    pred5 = jax.nn.log_softmax(logits5, axis=-1)
    target5 = jax.random.randint(k1, (N5,), 0, C5, dtype=jnp.int32)
    loss5 = nll_loss_pallas(pred5, target5, None)
    jax.block_until_ready(loss5)
    assert jnp.allclose(loss5, ref_loss(pred5, target5), atol=1e-5, rtol=1e-5)

    print("KERNEL_OK")
</pallas_src>

<mosaic_0001>
module attributes {stable_mosaic.version = 11 : i64} {
  func.func @_nll_sum_kernel(%arg0: i32, %arg1: i32, %arg2: memref<8x128xf32, #tpu.memory_space<vmem>>, %arg3: memref<8x4xi32, #tpu.memory_space<vmem>>, %arg4: memref<8x128xf32, #tpu.memory_space<vmem>>) attributes {dimension_semantics = [#tpu.dimension_semantics<parallel>, #tpu.dimension_semantics<arbitrary>], iteration_bounds = array<i64: 1, 1>, scalar_prefetch = 0 : i64, scratch_operands = 0 : i64, tpu.core_type = #tpu.core_type<tc>, window_params = [{transform_indices = @transform_0, window_bounds = array<i64: 8, 128>}, {transform_indices = @transform_1, window_bounds = array<i64: 8, 4>}, {transform_indices = @transform_2, window_bounds = array<i64: 8, 128>}]} {
    %c0_i32 = arith.constant 0 : i32
    %0 = arith.cmpi eq, %arg1, %c0_i32 : i32
    %1 = arith.extui %0 : i1 to i32
    %c0_i32_0 = arith.constant 0 : i32
    %2 = arith.cmpi ne, %1, %c0_i32_0 : i32
    scf.if %2 {
      %cst_9 = arith.constant 0.000000e+00 : f32
      %29 = vector.broadcast %cst_9 : f32 to vector<8x128xf32>
      %c0_10 = arith.constant 0 : index
      %c0_11 = arith.constant 0 : index
      %30 = vector.load %arg4[%c0_10, %c0_11] : memref<8x128xf32, #tpu.memory_space<vmem>>, vector<8x128xf32>
      tpu.vector_store %arg4[%c0_10, %c0_11], %29 {strides = array<i32>} : memref<8x128xf32, #tpu.memory_space<vmem>>, vector<8x128xf32>,
    } else {
    }
    %3 = tpu.iota {dimensions = array<i32: 1>} : vector<8x128xi32>
    %c0 = arith.constant 0 : index
    %c0_1 = arith.constant 0 : index
    %4 = vector.load %arg3[%c0, %c0_1] : memref<8x4xi32, #tpu.memory_space<vmem>>, vector<8x4xi32>
    %5 = vector.extract_strided_slice %4 {offsets = [0, 0], sizes = [8, 1], strides = [1, 1]} : vector<8x4xi32> to vector<8x1xi32>
    %6 = vector.broadcast %5 : vector<8x1xi32> to vector<8x128xi32>
    %7 = arith.cmpi eq, %3, %6 : vector<8x128xi32>
    %8 = vector.extract_strided_slice %4 {offsets = [0, 1], sizes = [8, 1], strides = [1, 1]} : vector<8x4xi32> to vector<8x1xi32>
    %9 = vector.broadcast %8 : vector<8x1xi32> to vector<8x128xi32>
    %10 = arith.cmpi eq, %3, %9 : vector<8x128xi32>
    %11 = arith.ori %7, %10 : vector<8x128xi1>
    %12 = vector.extract_strided_slice %4 {offsets = [0, 2], sizes = [8, 1], strides = [1, 1]} : vector<8x4xi32> to vector<8x1xi32>
    %13 = vector.broadcast %12 : vector<8x1xi32> to vector<8x128xi32>
    %14 = arith.cmpi eq, %3, %13 : vector<8x128xi32>
    %15 = arith.ori %11, %14 : vector<8x128xi1>
    %16 = vector.extract_strided_slice %4 {offsets = [0, 3], sizes = [8, 1], strides = [1, 1]} : vector<8x4xi32> to vector<8x1xi32>
    %17 = vector.broadcast %16 : vector<8x1xi32> to vector<8x128xi32>
    %18 = arith.cmpi eq, %3, %17 : vector<8x128xi32>
    %19 = arith.ori %15, %18 : vector<8x128xi1>
    %c0_2 = arith.constant 0 : index
    %c0_3 = arith.constant 0 : index
    %20 = vector.load %arg2[%c0_2, %c0_3] : memref<8x128xf32, #tpu.memory_space<vmem>>, vector<8x128xf32>
    %c0_i32_4 = arith.constant 0 : i32
    %21 = arith.sitofp %c0_i32_4 : i32 to f32
    %22 = vector.broadcast %21 : f32 to vector<8x128xf32>
    %23 = arith.select %19, %20, %22 : vector<8x128xi1>, vector<8x128xf32>
    %c0_5 = arith.constant 0 : index
    %c0_6 = arith.constant 0 : index
    %24 = vector.load %arg4[%c0_5, %c0_6] : memref<8x128xf32, #tpu.memory_space<vmem>>, vector<8x128xf32>
    %25 = vector.shape_cast %23 : vector<8x128xf32> to vector<1x8x128xf32>
    %cst = arith.constant dense<0.000000e+00> : vector<8x128xf32>
    %26 = vector.multi_reduction <add>, %25, %cst [0] : vector<1x8x128xf32> to vector<8x128xf32>
    %27 = arith.addf %24, %26 : vector<8x128xf32>
    %c0_7 = arith.constant 0 : index
    %c0_8 = arith.constant 0 : index
    %28 = vector.load %arg4[%c0_7, %c0_8] : memref<8x128xf32, #tpu.memory_space<vmem>>, vector<8x128xf32>
    tpu.vector_store %arg4[%c0_7, %c0_8], %27 {strides = array<i32>} : memref<8x128xf32, #tpu.memory_space<vmem>>, vector<8x128xf32>,
    return
  }
  func.func @transform_0(%arg0: i32, %arg1: i32) -> (i32, i32) {
    %c1_i32 = arith.constant 1 : i32
    %0 = arith.muli %arg0, %c1_i32 : i32
    %1 = arith.addi %0, %arg1 : i32
    %c0_i32 = arith.constant 0 : i32
    %c0_i32_0 = arith.constant 0 : i32
    return %1, %c0_i32 : i32, i32
  }
  func.func @transform_1(%arg0: i32, %arg1: i32) -> (i32, i32) {
    %c1_i32 = arith.constant 1 : i32
    %0 = arith.muli %arg0, %c1_i32 : i32
    %1 = arith.addi %0, %arg1 : i32
    %c0_i32 = arith.constant 0 : i32
    %c0_i32_0 = arith.constant 0 : i32
    return %1, %c0_i32 : i32, i32
  }
  func.func @transform_2(%arg0: i32, %arg1: i32) -> (i32, i32) {
    %c0_i32 = arith.constant 0 : i32
    %c0_i32_0 = arith.constant 0 : i32
    return %arg0, %c0_i32 : i32, i32
  }
}

</mosaic_0001>

<bundles_post_ra>
// kernel: tpu_custom_call.1
= control target key start
LH: loop header
LB: loop body
LE: loop exit
PB: predicated region body
PF: predicated region fallthrough
CT: control target
= control target key end

     0   :  { %v138_v1 = vmov 0   ;;  %v139_v2 = vmov 2   ;;  %s167_s0 = inlined_call_operand.vmem [shape: f32[8,128], index: 0, kind: input, shape index: {}]   ;;  %s168_s1 = inlined_call_operand.vmem [shape: s32[8,4], index: 1, kind: input, shape index: {}]   ;;  %s169_s2 = inlined_call_operand.hbm [shape: f32[8,128], index: 2, kind: output, shape index: {}]  }
   0x1   :  { %v53_v0 = vld [vmem:[%s168_s1] sm:$0xff]  ;;  %111 = vset.pattern.permute.xlu0 %v138_v1  ;;  %113 = vset.pattern.permute.xlu1 %v139_v2 }
   0x2   :  { %7 = vsyncpa [#allocation3], 0  ;;  %55 = vperm.xlu0 %111, %v53_v0   ;;  %64 = vperm.xlu1 %113, %v53_v0   ;;  %v140_v3 = vmov 1   ;;  %v141_v4 = vmov 3   ;;  %v51_v5 = vlaneseq  ;;  %v73_v11 = vld [vmem:[%s167_s0] sm:$0xff]  ;;  %s142_s12 = smov [#allocation2]  }
   0x3   :  { %s85_s13 = sshll.u32 %s142_s12, 4  ;;  %s86_s13 = int_to_ptr.vmem [resolvable:$true] %s85_s13 }
   0x4   :  { %v52_v8 = vand.u32 127, %v51_v5  ;;  %s116_s14 = scalar_lea.vmem %s86_s13, 128  ;;  %p121_p1 = scmp.lt.s32.totalorder %s86_s13, %s86_s13 }
   0x5   :  { %p117_p0 = scmp.ne.s32.totalorder %s86_s13, %s116_s14  ;;  %p122_p2 = scmp.lt.s32.totalorder %s116_s14, %s116_s14 }
   0x6   :  { %112 = vset.pattern.permute.xlu0 %v140_v3  ;;  %114 = vset.pattern.permute.xlu1 %v141_v4 }
   0x7   :  { %59 = vperm.xlu0 %112, %v53_v0   ;;  %69 = vperm.xlu1 %114, %v53_v0   ;;  %p123_p3 = por %p122_p2, %p121_p1 }
   0x9   :  { %p124_p4 = pnand %p123_p3, %p117_p0 }
   0xb   :  { %115 = vset.pattern.permute.xlu0 %v141_v4 }
  0x7d   :  { %v56_v6 = vpop.permute.xlu0 %55  ;;  %v65_v7 = vpop.permute.xlu1 %64 }
  0x7e   :  { %vm57_vm0 = vcmp.eq.s32.totalorder %v52_v8, %v56_v6  ;;  %vm66_vm3 = vcmp.eq.s32.totalorder %v52_v8, %v65_v7 }
  0x82   :  { %v60_v9 = vpop.permute.xlu0 %59  ;;  %v70_v10 = vpop.permute.xlu1 %69 }
  0x83   :  { %vm61_vm1 = vcmp.eq.s32.totalorder %v52_v8, %v60_v9  ;;  %vm71_vm2 = vcmp.eq.s32.totalorder %v52_v8, %v70_v10 }
  0x84   :  { %vm62_vm4 = vmor %vm57_vm0, %vm61_vm1 }
  0x85   :  { %vm67_vm5 = vmor %vm62_vm4, %vm66_vm3 }
  0x86   :  { %vm72_vm6 = vmor %vm67_vm5, %vm71_vm2 }
  0x87   :  { %v74_v12 = vsel %vm72_vm6, %v73_v11, 0.0 }
  0x88   :  { %78 = vst [vmem:[#allocation2] sm:$0xff] %v74_v12 }
  0x89   :  { %127 = shalt.err (!%p124_p4)
}
  0x8a   :  { %88 = dma.vmem_to_hbm [thread:$0]  %s86_s13, 128, %s169_s2, [#allocation3]  }
  0x8b   :  { %136 = dma.done.wait [#allocation3], 128  }
  0x8c   :  { %137 = vsyncadd [#allocation3], 4294967168 }
  0x8d   :  { %92 = vsyncpa [#allocation3], 1 }

</bundles_post_ra>
